<compile_context>
chip_gen: v7x
topology: tpu7x:2x2x1
jax: 0.10.0
libtpu: 0.0.40
codegen_flags: <defaults>
</compile_context>

<pallas_src>
import functools

import jax
import jax.numpy as jnp
import numpy as np
from jax import lax
from jax.experimental import pallas as pl
from jax.experimental.pallas import tpu as pltpu


def _infonce_cauchy_kernel(a_ref, b_ref, sqa_ref, sqb_ref, out_ref,
                           colsum_ab, colsum_bb, align_acc, l2_acc, *,
                           batch_size, tile_rows, exaggeration):
    i = pl.program_id(0)

    @pl.when(i == 0)
    def _init():
        colsum_ab[...] = jnp.zeros_like(colsum_ab)
        colsum_bb[...] = jnp.zeros_like(colsum_bb)
        align_acc[...] = jnp.zeros_like(align_acc)
        l2_acc[...] = jnp.zeros_like(l2_acc)

    # Row tile sliced out of the resident full view (no extra HBM traffic).
    row0 = pl.multiple_of(i * tile_rows, tile_rows)
    a_t = a_ref[pl.ds(row0, tile_rows), :]        # (TM, D) native dtype
    b_t = b_ref[pl.ds(row0, tile_rows), :]        # (TM, D)
    a_f = a_ref[...]                              # (B, D)
    b_f = b_ref[...]                              # (B, D)
    sq_a_row = sqa_ref[...]                       # (1, B) f32 (precomputed)
    sq_b_row = sqb_ref[...]                       # (1, B) f32 (precomputed)

    def sq_norm(x):                               # (rows, 1) f32
        xf = x.astype(jnp.float32)
        return jnp.sum(xf * xf, axis=-1, keepdims=True)

    sq_at = sq_norm(a_t)                          # (TM, 1)
    sq_bt = sq_norm(b_t)                          # (TM, 1)

    gram = functools.partial(
        lax.dot_general,
        dimension_numbers=(((1,), (1,)), ((), ())),   # contract last dims
        preferred_element_type=jnp.float32)

    def cauchy_slab(x_t, sq_x, y_f, sq_y_row):
        # (TM, B) Cauchy-similarity slab; temperature is pre-folded into the
        # inputs so d2 here already equals t^2 * ||x - y||^2.
        g = gram(x_t, y_f)                                    # (TM, B) f32
        d2 = jnp.maximum(sq_x + sq_y_row - 2.0 * g, 0.0)
        return 1.0 / (d2 + 1.0)                               # exact rcp

    # --- sim_ab: one matmul, reused for both reductions -------------------
    s_ab = cauchy_slab(a_t, sq_at, b_f, sq_b_row)
    rowsum_ab = jnp.sum(s_ab, axis=1, keepdims=True)           # (TM, 1)
    colsum_ab[...] += jnp.sum(s_ab, axis=0, keepdims=True)     # (1, B)

    # --- sim_aa: row sums only (self term removed) -------------------------
    s_aa = cauchy_slab(a_t, sq_at, a_f, sq_a_row)
    rowsum_aa = jnp.sum(s_aa, axis=1, keepdims=True) - 1.0     # (TM, 1)

    # --- sim_bb: symmetric, so row sums == column sums; accumulate columns -
    s_bb = cauchy_slab(b_t, sq_bt, b_f, sq_b_row)
    colsum_bb[...] += jnp.sum(s_bb, axis=0, keepdims=True)     # (1, B)

    # diag(sim_ab) straight from the (TM, D) tiles — no (B, B) matrix needed.
    diff = a_t.astype(jnp.float32) - b_t.astype(jnp.float32)
    d2_diag = jnp.sum(diff * diff, axis=-1, keepdims=True)     # (TM, 1)
    diag_ab = 1.0 / (d2_diag + 1.0)

    align_acc[...] += jnp.sum(jnp.log(diag_ab), axis=0, keepdims=True)
    l2_acc[...] += jnp.sum(jnp.log(rowsum_aa + rowsum_ab), axis=0, keepdims=True)

    @pl.when(i == pl.num_programs(0) - 1)
    def _finalize():
        inv_b = jnp.float32(1.0 / batch_size)
        # l1 row i = sum_j sim_ab[j, i] + sum_j!=i sim_bb[i, j]
        #          = colsum_ab[i] + (colsum_bb[i] - 1)          (bb symmetric)
        l1_terms = jnp.log(colsum_ab[...] + colsum_bb[...] - 1.0)   # (1, B)
        l1 = jnp.sum(l1_terms, keepdims=True) * inv_b               # (1, 1)
        l2 = l2_acc[...] * inv_b
        align = align_acc[...] * inv_b
        out_ref[...] = -(jnp.float32(exaggeration) * align - 0.5 * (l1 + l2))


def _pick_row_tile(batch_size, target, sublane_multiple):
    """Largest multiple-of-`sublane_multiple` divisor of B <= target."""
    if batch_size <= target:
        return batch_size
    tm = (target // sublane_multiple) * sublane_multiple
    while tm >= sublane_multiple:
        if batch_size % tm == 0:
            return tm
        tm -= sublane_multiple
    # TODO(synk): pad + mask path for awkward batch sizes; this fallback does
    # the whole batch in one (possibly VMEM-heavy) step.
    return batch_size


def infonce_cauchy(features, temperature=1.0, exaggeration=1.0, tile_rows=256):
    n, d = features.shape
    assert n % 2 == 0, "features must stack two views: shape (2*B, D)"
    batch_size = n // 2
    a = features[:batch_size]
    b = features[batch_size:]

    # Fold the temperature into the inputs: d2(t*x, t*y) = t^2 * d2(x, y).
    t = float(temperature)
    if t != 1.0:
        a = a * jnp.asarray(t, a.dtype)
        b = b * jnp.asarray(t, b.dtype)

    # Hoisted full-array squared norms (computed once, not per grid step).
    sq_a_row = jnp.sum(a.astype(jnp.float32) ** 2, axis=1)[None, :]   # (1, B)
    sq_b_row = jnp.sum(b.astype(jnp.float32) ** 2, axis=1)[None, :]   # (1, B)

    itemsize = jnp.dtype(features.dtype).itemsize
    sublane = max(8, 32 // max(itemsize, 1))       # 8 f32 / 16 bf16 / 32 int8
    tm = _pick_row_tile(batch_size, tile_rows, sublane)
    grid = (batch_size // tm,)

    # Explicit scoped-VMEM budget: single-buffered resident views + norm rows
    # + three (TM, B) f32 slabs + small scratch, with ~25% headroom.
    resident = 2 * batch_size * d * itemsize + 2 * batch_size * 4
    slabs = 3 * tm * batch_size * 4
    scratch = 2 * batch_size * 4 + 4 * tm * 4
    vmem_bytes = int(1.25 * (resident + slabs + scratch)) + (2 << 20)
    vmem_bytes = max(vmem_bytes, 32 * 1024 * 1024)
    vmem_bytes = min(vmem_bytes, 128 * 1024 * 1024)

    kernel = functools.partial(
        _infonce_cauchy_kernel,
        batch_size=batch_size,
        tile_rows=tm,
        exaggeration=float(exaggeration),
    )

    # Whole-array VMEM residency (single-buffered, copied in once).
    vmem_full = pl.BlockSpec(memory_space=pltpu.MemorySpace.VMEM)

    out = pl.pallas_call(
        kernel,
        out_shape=jax.ShapeDtypeStruct((1, 1), jnp.float32),
        grid_spec=pltpu.PrefetchScalarGridSpec(
            num_scalar_prefetch=0,
            grid=grid,
            in_specs=[vmem_full,    # a (B, D)
                      vmem_full,    # b (B, D)
                      vmem_full,    # sq_a_row (1, B)
                      vmem_full],   # sq_b_row (1, B)
            out_specs=pl.BlockSpec((1, 1), lambda i: (0, 0)),
            scratch_shapes=[
                pltpu.VMEM((1, batch_size), jnp.float32),   # colsum of sim_ab
                pltpu.VMEM((1, batch_size), jnp.float32),   # colsum of sim_bb
                pltpu.VMEM((1, 1), jnp.float32),            # alignment acc
                pltpu.VMEM((1, 1), jnp.float32),            # l2 acc
            ],
        ),
        compiler_params=pltpu.CompilerParams(
            # Grid axis accumulates into shared scratch -> reduction axis.
            dimension_semantics=("arbitrary",),
            vmem_limit_bytes=vmem_bytes),
    )(a, b, sq_a_row, sq_b_row)
    return out[0, 0]


def _reference(features, temperature=1.0, exaggeration=1.0):
    # Plain-JAX reference mirroring the PyTorch forward.
    features = features.astype(jnp.float32)
    n = features.shape[0]
    bs = n // 2
    a, b = features[:bs], features[bs:]

    def sim(x, y):
        d2 = jnp.maximum(
            jnp.sum(x * x, 1)[:, None] + jnp.sum(y * y, 1)[None, :]
            - 2.0 * x @ y.T, 0.0)
        return 1.0 / (d2 * temperature * temperature + 1.0)

    sim_aa, sim_bb, sim_ab = sim(a, a), sim(b, b), sim(a, b)
    tempered_alignment = jnp.mean(jnp.log(jnp.diagonal(sim_ab)))
    eye = jnp.eye(bs, dtype=bool)
    sim_aa = jnp.where(eye, 0.0, sim_aa)
    sim_bb = jnp.where(eye, 0.0, sim_bb)
    l1 = jnp.mean(jnp.log(jnp.sum(jnp.hstack((sim_ab.T, sim_bb)), axis=1)))
    l2 = jnp.mean(jnp.log(jnp.sum(jnp.hstack((sim_aa, sim_ab)), axis=1)))
    return -(exaggeration * tempered_alignment - (l1 + l2) / 2.0)


if __name__ == "__main__":
    key = jax.random.PRNGKey(0)
    batch_size, hidden = 4, 32
    # features stacks two augmented views: shape (2*B, D)
    features = jax.random.normal(key, (2 * batch_size, hidden), jnp.float32)

    # temperature == exaggeration == 1 (module defaults)
    loss = jax.block_until_ready(infonce_cauchy(features, 1.0, 1.0))
    ref = jax.block_until_ready(_reference(features, 1.0, 1.0))
    assert np.allclose(np.asarray(loss), np.asarray(ref), rtol=1e-4, atol=1e-4), (
        loss, ref)

    # Non-trivial temperature / exaggeration (exercises the folded-temperature path).
    loss2 = jax.block_until_ready(infonce_cauchy(features, 0.5, 1.3))
    ref2 = jax.block_until_ready(_reference(features, 0.5, 1.3))
    assert np.allclose(np.asarray(loss2), np.asarray(ref2), rtol=1e-4, atol=1e-4), (
        loss2, ref2)

    print("KERNEL_OK")
</pallas_src>

<mosaic_0001>
module attributes {stable_mosaic.version = 11 : i64} {
  func.func @_infonce_cauchy_kernel(%arg0: i32, %arg1: memref<4x32xf32, #tpu.memory_space<vmem>>, %arg2: memref<4x32xf32, #tpu.memory_space<vmem>>, %arg3: memref<1x4xf32, #tpu.memory_space<vmem>>, %arg4: memref<1x4xf32, #tpu.memory_space<vmem>>, %arg5: memref<1x1xf32, #tpu.memory_space<vmem>>, %arg6: memref<1x4xf32, #tpu.memory_space<vmem>>, %arg7: memref<1x4xf32, #tpu.memory_space<vmem>>, %arg8: memref<1x1xf32, #tpu.memory_space<vmem>>, %arg9: memref<1x1xf32, #tpu.memory_space<vmem>>) attributes {dimension_semantics = [#tpu.dimension_semantics<arbitrary>], iteration_bounds = array<i64: 1>, scalar_prefetch = 0 : i64, scratch_operands = 4 : i64, tpu.core_type = #tpu.core_type<tc>, window_params = [{pipeline_mode = #tpu.pipeline_mode<synchronous>, transform_indices = @transform_0, window_bounds = array<i64: 4, 32>}, {pipeline_mode = #tpu.pipeline_mode<synchronous>, transform_indices = @transform_1, window_bounds = array<i64: 4, 32>}, {pipeline_mode = #tpu.pipeline_mode<synchronous>, transform_indices = @transform_2, window_bounds = array<i64: 1, 4>}, {pipeline_mode = #tpu.pipeline_mode<synchronous>, transform_indices = @transform_3, window_bounds = array<i64: 1, 4>}, {pipeline_mode = #tpu.pipeline_mode<synchronous>, transform_indices = @transform_4, window_bounds = array<i64: 1, 1>}]} {
    %c0_i32 = arith.constant 0 : i32
    %0 = arith.cmpi eq, %arg0, %c0_i32 : i32
    %1 = arith.extui %0 : i1 to i32
    %c0_i32_0 = arith.constant 0 : i32
    %2 = arith.cmpi ne, %1, %c0_i32_0 : i32
    scf.if %2 {
      %cst_54 = arith.constant 0.000000e+00 : f32
      %98 = vector.broadcast %cst_54 : f32 to vector<1x4xf32>
      %c0_55 = arith.constant 0 : index
      %c0_56 = arith.constant 0 : index
      %99 = vector.load %arg6[%c0_55, %c0_56] : memref<1x4xf32, #tpu.memory_space<vmem>>, vector<1x4xf32>
      tpu.vector_store %arg6[%c0_55, %c0_56], %98 {strides = array<i32>} : memref<1x4xf32, #tpu.memory_space<vmem>>, vector<1x4xf32>,
      %cst_57 = arith.constant 0.000000e+00 : f32
      %100 = vector.broadcast %cst_57 : f32 to vector<1x4xf32>
      %c0_58 = arith.constant 0 : index
      %c0_59 = arith.constant 0 : index
      %101 = vector.load %arg7[%c0_58, %c0_59] : memref<1x4xf32, #tpu.memory_space<vmem>>, vector<1x4xf32>
      tpu.vector_store %arg7[%c0_58, %c0_59], %100 {strides = array<i32>} : memref<1x4xf32, #tpu.memory_space<vmem>>, vector<1x4xf32>,
      %cst_60 = arith.constant 0.000000e+00 : f32
      %102 = vector.broadcast %cst_60 : f32 to vector<1x1xf32>
      %c0_61 = arith.constant 0 : index
      %c0_62 = arith.constant 0 : index
      %103 = vector.load %arg8[%c0_61, %c0_62] : memref<1x1xf32, #tpu.memory_space<vmem>>, vector<1x1xf32>
      tpu.vector_store %arg8[%c0_61, %c0_62], %102 {strides = array<i32>} : memref<1x1xf32, #tpu.memory_space<vmem>>, vector<1x1xf32>,
      %cst_63 = arith.constant 0.000000e+00 : f32
      %104 = vector.broadcast %cst_63 : f32 to vector<1x1xf32>
      %c0_64 = arith.constant 0 : index
      %c0_65 = arith.constant 0 : index
      %105 = vector.load %arg9[%c0_64, %c0_65] : memref<1x1xf32, #tpu.memory_space<vmem>>, vector<1x1xf32>
      tpu.vector_store %arg9[%c0_64, %c0_65], %104 {strides = array<i32>} : memref<1x1xf32, #tpu.memory_space<vmem>>, vector<1x1xf32>,
    } else {
    }
    %c4_i32 = arith.constant 4 : i32
    %3 = arith.muli %arg0, %c4_i32 : i32
    %4 = tpu.assume_multiple %3, 4 : i32
    %5 = arith.index_cast %4 : i32 to index
    %c0 = arith.constant 0 : index
    %6 = vector.load %arg1[%5, %c0] : memref<4x32xf32, #tpu.memory_space<vmem>>, vector<4x32xf32>
    %7 = arith.index_cast %4 : i32 to index
    %c0_1 = arith.constant 0 : index
    %8 = vector.load %arg2[%7, %c0_1] : memref<4x32xf32, #tpu.memory_space<vmem>>, vector<4x32xf32>
    %c0_2 = arith.constant 0 : index
    %c0_3 = arith.constant 0 : index
    %9 = vector.load %arg1[%c0_2, %c0_3] : memref<4x32xf32, #tpu.memory_space<vmem>>, vector<4x32xf32>
    %c0_4 = arith.constant 0 : index
    %c0_5 = arith.constant 0 : index
    %10 = vector.load %arg2[%c0_4, %c0_5] : memref<4x32xf32, #tpu.memory_space<vmem>>, vector<4x32xf32>
    %c0_6 = arith.constant 0 : index
    %c0_7 = arith.constant 0 : index
    %11 = vector.load %arg3[%c0_6, %c0_7] : memref<1x4xf32, #tpu.memory_space<vmem>>, vector<1x4xf32>
    %c0_8 = arith.constant 0 : index
    %c0_9 = arith.constant 0 : index
    %12 = vector.load %arg4[%c0_8, %c0_9] : memref<1x4xf32, #tpu.memory_space<vmem>>, vector<1x4xf32>
    %13 = arith.mulf %6, %6 : vector<4x32xf32>
    %cst = arith.constant dense<0.000000e+00> : vector<4xf32>
    %14 = vector.multi_reduction <add>, %13, %cst [1] : vector<4x32xf32> to vector<4xf32>
    %15 = vector.shape_cast %14 : vector<4xf32> to vector<4x1xf32>
    %16 = arith.mulf %8, %8 : vector<4x32xf32>
    %cst_10 = arith.constant dense<0.000000e+00> : vector<4xf32>
    %17 = vector.multi_reduction <add>, %16, %cst_10 [1] : vector<4x32xf32> to vector<4xf32>
    %18 = vector.shape_cast %17 : vector<4xf32> to vector<4x1xf32>
    %cst_11 = arith.constant dense<0.000000e+00> : vector<4x4xf32>
    %19 = tpu.matmul %6, %10, %cst_11 {dimension_numbers = #tpu.dot_dimension_numbers<[1], [1], [0], [0], [0, 0, 1, 0], [], []>} : vector<4x32xf32>, vector<4x32xf32>, vector<4x4xf32> -> vector<4x4xf32>
    %20 = vector.broadcast %15 : vector<4x1xf32> to vector<4x4xf32>
    %21 = vector.broadcast %12 : vector<1x4xf32> to vector<4x4xf32>
    %22 = arith.addf %20, %21 : vector<4x4xf32>
    %cst_12 = arith.constant 2.000000e+00 : f32
    %23 = vector.broadcast %cst_12 : f32 to vector<4x4xf32>
    %24 = arith.mulf %23, %19 : vector<4x4xf32>
    %25 = arith.subf %22, %24 : vector<4x4xf32>
    %cst_13 = arith.constant 0.000000e+00 : f32
    %26 = vector.broadcast %cst_13 : f32 to vector<4x4xf32>
    %27 = arith.maximumf %25, %26 : vector<4x4xf32>
    %cst_14 = arith.constant 1.000000e+00 : f32
    %28 = vector.broadcast %cst_14 : f32 to vector<4x4xf32>
    %29 = arith.addf %27, %28 : vector<4x4xf32>
    %cst_15 = arith.constant 1.000000e+00 : f32
    %30 = vector.broadcast %cst_15 : f32 to vector<4x4xf32>
    %31 = arith.divf %30, %29 : vector<4x4xf32>
    %cst_16 = arith.constant dense<0.000000e+00> : vector<4xf32>
    %32 = vector.multi_reduction <add>, %31, %cst_16 [1] : vector<4x4xf32> to vector<4xf32>
    %33 = vector.shape_cast %32 : vector<4xf32> to vector<4x1xf32>
    %c0_17 = arith.constant 0 : index
    %c0_18 = arith.constant 0 : index
    %34 = vector.load %arg6[%c0_17, %c0_18] : memref<1x4xf32, #tpu.memory_space<vmem>>, vector<1x4xf32>
    %cst_19 = arith.constant dense<0.000000e+00> : vector<4xf32>
    %35 = vector.multi_reduction <add>, %31, %cst_19 [0] : vector<4x4xf32> to vector<4xf32>
    %36 = vector.shape_cast %35 : vector<4xf32> to vector<1x4xf32>
    %37 = arith.addf %34, %36 : vector<1x4xf32>
    %c0_20 = arith.constant 0 : index
    %c0_21 = arith.constant 0 : index
    %38 = vector.load %arg6[%c0_20, %c0_21] : memref<1x4xf32, #tpu.memory_space<vmem>>, vector<1x4xf32>
    tpu.vector_store %arg6[%c0_20, %c0_21], %37 {strides = array<i32>} : memref<1x4xf32, #tpu.memory_space<vmem>>, vector<1x4xf32>,
    %cst_22 = arith.constant dense<0.000000e+00> : vector<4x4xf32>
    %39 = tpu.matmul %6, %9, %cst_22 {dimension_numbers = #tpu.dot_dimension_numbers<[1], [1], [0], [0], [0, 0, 1, 0], [], []>} : vector<4x32xf32>, vector<4x32xf32>, vector<4x4xf32> -> vector<4x4xf32>
    %40 = vector.broadcast %15 : vector<4x1xf32> to vector<4x4xf32>
    %41 = vector.broadcast %11 : vector<1x4xf32> to vector<4x4xf32>
    %42 = arith.addf %40, %41 : vector<4x4xf32>
    %cst_23 = arith.constant 2.000000e+00 : f32
    %43 = vector.broadcast %cst_23 : f32 to vector<4x4xf32>
    %44 = arith.mulf %43, %39 : vector<4x4xf32>
    %45 = arith.subf %42, %44 : vector<4x4xf32>
    %cst_24 = arith.constant 0.000000e+00 : f32
    %46 = vector.broadcast %cst_24 : f32 to vector<4x4xf32>
    %47 = arith.maximumf %45, %46 : vector<4x4xf32>
    %cst_25 = arith.constant 1.000000e+00 : f32
    %48 = vector.broadcast %cst_25 : f32 to vector<4x4xf32>
    %49 = arith.addf %47, %48 : vector<4x4xf32>
    %cst_26 = arith.constant 1.000000e+00 : f32
    %50 = vector.broadcast %cst_26 : f32 to vector<4x4xf32>
    %51 = arith.divf %50, %49 : vector<4x4xf32>
    %cst_27 = arith.constant dense<0.000000e+00> : vector<4xf32>
    %52 = vector.multi_reduction <add>, %51, %cst_27 [1] : vector<4x4xf32> to vector<4xf32>
    %53 = vector.shape_cast %52 : vector<4xf32> to vector<4x1xf32>
    %cst_28 = arith.constant 1.000000e+00 : f32
    %54 = vector.broadcast %cst_28 : f32 to vector<4x1xf32>
    %55 = arith.subf %53, %54 : vector<4x1xf32>
    %cst_29 = arith.constant dense<0.000000e+00> : vector<4x4xf32>
    %56 = tpu.matmul %8, %10, %cst_29 {dimension_numbers = #tpu.dot_dimension_numbers<[1], [1], [0], [0], [0, 0, 1, 0], [], []>} : vector<4x32xf32>, vector<4x32xf32>, vector<4x4xf32> -> vector<4x4xf32>
    %57 = vector.broadcast %18 : vector<4x1xf32> to vector<4x4xf32>
    %58 = vector.broadcast %12 : vector<1x4xf32> to vector<4x4xf32>
    %59 = arith.addf %57, %58 : vector<4x4xf32>
    %cst_30 = arith.constant 2.000000e+00 : f32
    %60 = vector.broadcast %cst_30 : f32 to vector<4x4xf32>
    %61 = arith.mulf %60, %56 : vector<4x4xf32>
    %62 = arith.subf %59, %61 : vector<4x4xf32>
    %cst_31 = arith.constant 0.000000e+00 : f32
    %63 = vector.broadcast %cst_31 : f32 to vector<4x4xf32>
    %64 = arith.maximumf %62, %63 : vector<4x4xf32>
    %cst_32 = arith.constant 1.000000e+00 : f32
    %65 = vector.broadcast %cst_32 : f32 to vector<4x4xf32>
    %66 = arith.addf %64, %65 : vector<4x4xf32>
    %cst_33 = arith.constant 1.000000e+00 : f32
    %67 = vector.broadcast %cst_33 : f32 to vector<4x4xf32>
    %68 = arith.divf %67, %66 : vector<4x4xf32>
    %c0_34 = arith.constant 0 : index
    %c0_35 = arith.constant 0 : index
    %69 = vector.load %arg7[%c0_34, %c0_35] : memref<1x4xf32, #tpu.memory_space<vmem>>, vector<1x4xf32>
    %cst_36 = arith.constant dense<0.000000e+00> : vector<4xf32>
    %70 = vector.multi_reduction <add>, %68, %cst_36 [0] : vector<4x4xf32> to vector<4xf32>
    %71 = vector.shape_cast %70 : vector<4xf32> to vector<1x4xf32>
    %72 = arith.addf %69, %71 : vector<1x4xf32>
    %c0_37 = arith.constant 0 : index
    %c0_38 = arith.constant 0 : index
    %73 = vector.load %arg7[%c0_37, %c0_38] : memref<1x4xf32, #tpu.memory_space<vmem>>, vector<1x4xf32>
    tpu.vector_store %arg7[%c0_37, %c0_38], %72 {strides = array<i32>} : memref<1x4xf32, #tpu.memory_space<vmem>>, vector<1x4xf32>,
    %74 = arith.subf %6, %8 : vector<4x32xf32>
    %75 = arith.mulf %74, %74 : vector<4x32xf32>
    %cst_39 = arith.constant dense<0.000000e+00> : vector<4xf32>
    %76 = vector.multi_reduction <add>, %75, %cst_39 [1] : vector<4x32xf32> to vector<4xf32>
    %77 = vector.shape_cast %76 : vector<4xf32> to vector<4x1xf32>
    %cst_40 = arith.constant 1.000000e+00 : f32
    %78 = vector.broadcast %cst_40 : f32 to vector<4x1xf32>
    %79 = arith.addf %77, %78 : vector<4x1xf32>
    %cst_41 = arith.constant 1.000000e+00 : f32
    %80 = vector.broadcast %cst_41 : f32 to vector<4x1xf32>
    %81 = arith.divf %80, %79 : vector<4x1xf32>
    %c0_42 = arith.constant 0 : index
    %c0_43 = arith.constant 0 : index
    %82 = vector.load %arg8[%c0_42, %c0_43] : memref<1x1xf32, #tpu.memory_space<vmem>>, vector<1x1xf32>
    %83 = math.log %81 : vector<4x1xf32>
    %cst_44 = arith.constant dense<0.000000e+00> : vector<1xf32>
    %84 = vector.multi_reduction <add>, %83, %cst_44 [0] : vector<4x1xf32> to vector<1xf32>
    %85 = vector.shape_cast %84 : vector<1xf32> to vector<1x1xf32>
    %86 = arith.addf %82, %85 : vector<1x1xf32>
    %c0_45 = arith.constant 0 : index
    %c0_46 = arith.constant 0 : index
    %87 = vector.load %arg8[%c0_45, %c0_46] : memref<1x1xf32, #tpu.memory_space<vmem>>, vector<1x1xf32>
    tpu.vector_store %arg8[%c0_45, %c0_46], %86 {strides = array<i32>} : memref<1x1xf32, #tpu.memory_space<vmem>>, vector<1x1xf32>,
    %c0_47 = arith.constant 0 : index
    %c0_48 = arith.constant 0 : index
    %88 = vector.load %arg9[%c0_47, %c0_48] : memref<1x1xf32, #tpu.memory_space<vmem>>, vector<1x1xf32>
    %89 = arith.addf %55, %33 : vector<4x1xf32>
    %90 = math.log %89 : vector<4x1xf32>
    %cst_49 = arith.constant dense<0.000000e+00> : vector<1xf32>
    %91 = vector.multi_reduction <add>, %90, %cst_49 [0] : vector<4x1xf32> to vector<1xf32>
    %92 = vector.shape_cast %91 : vector<1xf32> to vector<1x1xf32>
    %93 = arith.addf %88, %92 : vector<1x1xf32>
    %c0_50 = arith.constant 0 : index
    %c0_51 = arith.constant 0 : index
    %94 = vector.load %arg9[%c0_50, %c0_51] : memref<1x1xf32, #tpu.memory_space<vmem>>, vector<1x1xf32>
    tpu.vector_store %arg9[%c0_50, %c0_51], %93 {strides = array<i32>} : memref<1x1xf32, #tpu.memory_space<vmem>>, vector<1x1xf32>,
    %c0_i32_52 = arith.constant 0 : i32
    %95 = arith.cmpi eq, %arg0, %c0_i32_52 : i32
    %96 = arith.extui %95 : i1 to i32
    %c0_i32_53 = arith.constant 0 : i32
    %97 = arith.cmpi ne, %96, %c0_i32_53 : i32
    scf.if %97 {
      %c0_54 = arith.constant 0 : index
      %c0_55 = arith.constant 0 : index
      %98 = vector.load %arg6[%c0_54, %c0_55] : memref<1x4xf32, #tpu.memory_space<vmem>>, vector<1x4xf32>
      %c0_56 = arith.constant 0 : index
      %c0_57 = arith.constant 0 : index
      %99 = vector.load %arg7[%c0_56, %c0_57] : memref<1x4xf32, #tpu.memory_space<vmem>>, vector<1x4xf32>
      %100 = arith.addf %98, %99 : vector<1x4xf32>
      %cst_58 = arith.constant 1.000000e+00 : f32
      %101 = vector.broadcast %cst_58 : f32 to vector<1x4xf32>
      %102 = arith.subf %100, %101 : vector<1x4xf32>
      %103 = math.log %102 : vector<1x4xf32>
      %104 = vector.shape_cast %103 : vector<1x4xf32> to vector<1x1x4xf32>
      %cst_59 = arith.constant dense<0.000000e+00> : vector<1xf32>
      %105 = vector.multi_reduction <add>, %104, %cst_59 [1, 2] : vector<1x1x4xf32> to vector<1xf32>
      %106 = vector.shape_cast %105 : vector<1xf32> to vector<1x1x1xf32>
      %107 = vector.extract %106[0, 0, 0] : f32 from vector<1x1x1xf32>
      %108 = vector.broadcast %107 : f32 to vector<1x1xf32>
      %cst_60 = arith.constant 2.500000e-01 : f32
      %109 = vector.broadcast %cst_60 : f32 to vector<1x1xf32>
      %110 = arith.mulf %108, %109 : vector<1x1xf32>
      %c0_61 = arith.constant 0 : index
      %c0_62 = arith.constant 0 : index
      %111 = vector.load %arg9[%c0_61, %c0_62] : memref<1x1xf32, #tpu.memory_space<vmem>>, vector<1x1xf32>
      %cst_63 = arith.constant 2.500000e-01 : f32
      %112 = vector.broadcast %cst_63 : f32 to vector<1x1xf32>
      %113 = arith.mulf %111, %112 : vector<1x1xf32>
      %c0_64 = arith.constant 0 : index
      %c0_65 = arith.constant 0 : index
      %114 = vector.load %arg8[%c0_64, %c0_65] : memref<1x1xf32, #tpu.memory_space<vmem>>, vector<1x1xf32>
      %cst_66 = arith.constant 2.500000e-01 : f32
      %115 = vector.broadcast %cst_66 : f32 to vector<1x1xf32>
      %116 = arith.mulf %114, %115 : vector<1x1xf32>
      %cst_67 = arith.constant 1.000000e+00 : f32
      %117 = vector.broadcast %cst_67 : f32 to vector<1x1xf32>
      %118 = arith.mulf %117, %116 : vector<1x1xf32>
      %119 = arith.addf %110, %113 : vector<1x1xf32>
      %cst_68 = arith.constant 5.000000e-01 : f32
      %120 = vector.broadcast %cst_68 : f32 to vector<1x1xf32>
      %121 = arith.mulf %120, %119 : vector<1x1xf32>
      %122 = arith.subf %118, %121 : vector<1x1xf32>
      %cst_69 = arith.constant 0.000000e+00 : f32
      %123 = vector.broadcast %cst_69 : f32 to vector<1x1xf32>
      %124 = arith.subf %123, %122 : vector<1x1xf32>
      %c0_70 = arith.constant 0 : index
      %c0_71 = arith.constant 0 : index
      %125 = vector.load %arg5[%c0_70, %c0_71] : memref<1x1xf32, #tpu.memory_space<vmem>>, vector<1x1xf32>
      tpu.vector_store %arg5[%c0_70, %c0_71], %124 {strides = array<i32>} : memref<1x1xf32, #tpu.memory_space<vmem>>, vector<1x1xf32>,
    } else {
    }
    return
  }
  func.func @transform_0(%arg0: i32) -> (i32, i32) {
    %c0_i32 = arith.constant 0 : i32
    %c0_i32_0 = arith.constant 0 : i32
    %c0_i32_1 = arith.constant 0 : i32
    return %c0_i32, %c0_i32_0 : i32, i32
  }
  func.func @transform_1(%arg0: i32) -> (i32, i32) {
    %c0_i32 = arith.constant 0 : i32
    %c0_i32_0 = arith.constant 0 : i32
    %c0_i32_1 = arith.constant 0 : i32
    return %c0_i32, %c0_i32_0 : i32, i32
  }
  func.func @transform_2(%arg0: i32) -> (i32, i32) {
    %c0_i32 = arith.constant 0 : i32
    %c0_i32_0 = arith.constant 0 : i32
    %c0_i32_1 = arith.constant 0 : i32
    return %c0_i32, %c0_i32_0 : i32, i32
  }
  func.func @transform_3(%arg0: i32) -> (i32, i32) {
    %c0_i32 = arith.constant 0 : i32
    %c0_i32_0 = arith.constant 0 : i32
    %c0_i32_1 = arith.constant 0 : i32
    return %c0_i32, %c0_i32_0 : i32, i32
  }
  func.func @transform_4(%arg0: i32) -> (i32, i32) {
    %c0_i32 = arith.constant 0 : i32
    %c0_i32_0 = arith.constant 0 : i32
    %c0_i32_1 = arith.constant 0 : i32
    return %c0_i32, %c0_i32_0 : i32, i32
  }
}

</mosaic_0001>

<bundles_post_ra>
// kernel: tpu_custom_call.1
= control target key start
LH: loop header
LB: loop body
LE: loop exit
PB: predicated region body
PF: predicated region fallthrough
CT: control target
= control target key end

     0   :  { %9 = vsyncpa [#allocation7], 0  ;;  %s676_s0 = inlined_call_operand.hbm [shape: f32[4,32], index: 0, kind: input, shape index: {}]   ;;  %s677_s1 = inlined_call_operand.hbm [shape: f32[4,32], index: 1, kind: input, shape index: {}]   ;;  %s678_s2 = inlined_call_operand.vmem [shape: f32[1,4], index: 2, kind: input, shape index: {}]   ;;  %s679_s3 = inlined_call_operand.vmem [shape: f32[1,4], index: 3, kind: input, shape index: {}]   ;;  %s680_s4 = inlined_call_operand.hbm [shape: f32[1,1], index: 4, kind: output, shape index: {}]  }
   0x1   :  { %10 = vsyncpa [#allocation10], 0 }
   0x2   :  { %11 = vsyncpa [#allocation8], 0  ;;  %s559_s15 = smov [#allocation6]   ;;  %s560_s17 = smov [#allocation9]  }
   0x3   :  { %s18_s16 = sshll.u32 %s559_s15, 4  ;;  %s28_s18 = sshll.u32 %s560_s17, 4  ;;  %s19_s16 = int_to_ptr.vmem [resolvable:$true] %s18_s16  ;;  %s29_s18 = int_to_ptr.vmem [resolvable:$true] %s28_s18 }
   0x4   :  { %s487_s21 = scalar_lea.hbm %s676_s0, 64 }
   0x5   :  { %p488_p0 = scmp.ne.s32.totalorder %s676_s0, %s487_s21  ;;  %p491_p1 = scmp.lt.u32.totalorder %s487_s21, %s676_s0 }
   0x7   :  { %p493_p2 = pnand %p491_p1, %p488_p0 }
   0x9   :  { %496 = shalt.err (!%p493_p2)
}
   0xa   :  { %s497_s26 = scalar_lea.vmem %s19_s16, 64  ;;  %p502_p4 = scmp.lt.s32.totalorder %s19_s16, %s19_s16 }
   0xb   :  { %p498_p3 = scmp.ne.s32.totalorder %s19_s16, %s497_s26  ;;  %p503_p5 = scmp.lt.s32.totalorder %s497_s26, %s497_s26 }
   0xd   :  { %p504_p6 = por %p503_p5, %p502_p4 }
   0xf   :  { %p505_p7 = pnand %p504_p6, %p498_p3 }
  0x11   :  { %508 = shalt.err (!%p505_p7)
}
  0x12   :  { %21 = dma.hbm_to_vmem [thread:$0]  %s676_s0, 64, %s19_s16, [#allocation7]  }
  0x13   :  { %s509_s5 = scalar_lea.hbm %s677_s1, 64 }
  0x14   :  { %p510_p8 = scmp.ne.s32.totalorder %s677_s1, %s509_s5  ;;  %p513_p9 = scmp.lt.u32.totalorder %s509_s5, %s677_s1 }
  0x16   :  { %p515_p10 = pnand %p513_p9, %p510_p8 }
  0x18   :  { %518 = shalt.err (!%p515_p10)
}
  0x19   :  { %s519_s10 = scalar_lea.vmem %s29_s18, 64  ;;  %p524_p12 = scmp.lt.s32.totalorder %s29_s18, %s29_s18 }
  0x1a   :  { %p520_p11 = scmp.ne.s32.totalorder %s29_s18, %s519_s10  ;;  %p525_p13 = scmp.lt.s32.totalorder %s519_s10, %s519_s10 }
  0x1c   :  { %p526_p0 = por %p525_p13, %p524_p12 }
  0x1e   :  { %p527_p1 = pnand %p526_p0, %p520_p11 }
  0x20   :  { %530 = shalt.err (!%p527_p1)
}
  0x21   :  { %31 = dma.hbm_to_vmem [thread:$0]  %s677_s1, 64, %s29_s18, [#allocation10]  }
  0x22   :  { %553 = dma.done.wait [#allocation7], 64  }
  0x23   :  { %554 = vsyncadd [#allocation7], 4294967232 }
  0x24   :  { %555 = dma.done.wait [#allocation10], 64  }
  0x25   :  { %556 = vsyncadd [#allocation10], 4294967232  ;;  %v561_v0 = vmov 0.0   ;;  %vm562_vm0 = vmmov 0   ;;  %vm70_vm1 = vcmask 261120   ;;  %vm62_vm2 = vcmask 257024  }
  0x26   :  { %451 = vmatprep.subr.mxu0 %v561_v0  ;;  %456 = vmatprep.subr.mxu1 %v561_v0  ;;  %v58_v1 = vld [vmem:[#allocation9] sm:$0xf]  ;;  %v57_v2 = vld [vmem:[#allocation6] sm:$0xf]  ;;  %vm46_vm3 = vcmask 24576   ;;  %vm160_vm4 = vcmask 27648  }
  0x27   :  { %453 = vmatprep.mubr.msk.f32.mxu0 %vm562_vm0, %v561_v0  ;;  %458 = vmatprep.mubr.msk.f32.mxu1 %vm562_vm0, %v561_v0  ;;  %v619_v3 = vld [vmem:[#allocation6] sm:$0xf]  ;;  %v626_v5 = vld [vmem:[#allocation9] sm:$0xf]  ;;  %47 = vst.msk [vmem:[#allocation2] sm:$0x1] %vm46_vm3, %v561_v0 }
  0x28   :  { %452 = vmatpush3.xpose.msk.msra.mxu0 %vm70_vm1, %v58_v1  ;;  %457 = vmatpush3.xpose.msk.msra.mxu1 %vm70_vm1, %v57_v2  ;;  %v61_v4 = vmul.f32 %v619_v3, %v619_v3  ;;  %v66_v7 = vmul.f32 %v626_v5, %v626_v5  ;;  %48 = vst.msk [vmem:[#allocation3] sm:$0x1] %vm46_vm3, %v561_v0  ;;  %v440_v10 = vld [vmem:[%s678_s2] ss:$0 sm:$0xff]  ;;  %vm49_vm5 = vcmask 0   ;;  %vm365_vm6 = vcmask 1043456  }
  0x29   :  { %461 = vmatprep.subr.mxu0 %v561_v0  ;;  %v437_v11 = vld [vmem:[%s679_s3] ss:$0 sm:$0xff]  ;;  %v354_v60 = vsub.f32 %v619_v3, %v626_v5  ;;  %50 = vst.msk [vmem:[#allocation4] sm:$0x1] %vm49_vm5, %v561_v0  ;;  %51 = vst.msk [vmem:[#allocation5] sm:$0x1] %vm49_vm5, %v561_v0 }
  0x2a   :  { %v63_v6 = vsel %vm62_vm2, %v61_v4, 0.0  ;;  %v67_v8 = vsel %vm62_vm2, %v66_v7, 0.0  ;;  %s563_s3 = smov [#allocation11]  }
  0x2b   :  { %454 = vmatmul.mubr.msk.f32.vlgmr.msra.gmra.mrb[0].mxu0 %vm70_vm1, %v619_v3  ;;  %459 = vmatmul.mubr.msk.f32.vlgmr.msra.gmra.mrb[0].mxu1 %vm70_vm1, %v619_v3  ;;  %v355_v63 = vmul.f32 %v354_v60, %v354_v60  ;;  %s425_s15 = sshll.u32 %s563_s3, 4  ;;  %s426_s15 = int_to_ptr.vmem [resolvable:$true] %s425_s15 }
  0x2c   :  { %462 = vmatpush3.xpose.msk.msra.mxu0 %vm70_vm1, %v58_v1  ;;  %463 = vmatprep.mubr.msk.f32.mxu0 %vm562_vm0, %v561_v0  ;;  %s531_s16 = scalar_lea.vmem %s426_s15, 16  ;;  %s535_s17 = scalar_lea.vmem %s426_s15, 32 }
  0x2d   :  { %64 = vadd.xlane.f32.xlu0 %v63_v6  ;;  %v356_v2 = vsel %vm62_vm2, %v355_v63, 0.0  ;;  %p532_p2 = scmp.ne.s32.totalorder %s426_s15, %s531_s16  ;;  %p536_p3 = scmp.lt.s32.totalorder %s426_s15, %s426_s15 }
  0x2e   :  { %v164_v49 = vld [vmem:[#allocation2] sm:$0x1]  ;;  %p537_p4 = scmp.lt.s32.totalorder %s535_s17, %s531_s16 }
  0x2f   :  { %464 = vmatmul.mubr.msk.f32.vlgmr.msra.gmra.mrb[2].mxu0 %vm70_vm1, %v626_v5  ;;  %v344_v53 = vld [vmem:[#allocation3] sm:$0x1] }
  0x30   :  { %p538_p5 = por %p537_p4, %p536_p3 }
  0x31   :  { %68 = vadd.xlane.f32.xlu0 %v67_v8 }
  0x32   :  { %p539_p6 = pnand %p538_p5, %p532_p2 }
  0xba   :  { %v65_v9 = vpop.xlane.xlu0 %64 }
  0xbb   :  { %v253_v12 = vadd.f32 %v440_v10, %v65_v9  ;;  %v153_v13 = vadd.f32 %v437_v11, %v65_v9 }
  0xbe   :  { %v69_v14 = vpop.xlane.xlu0 %68 }
  0xbf   :  { %v337_v23 = vadd.f32 %v437_v11, %v69_v14 }
  0xfe   :  { %v143_v15 = vpop.f32.mrb[0].mxu0  ;;  %v243_v16 = vpop.f32.mrb[0].mxu1 }
  0xff   :  { %v154_v17 = vmul.f32 2.0, %v143_v15  ;;  %v455_v18 = vpop.f32.mrb[1].mxu0  ;;  %v254_v19 = vmul.f32 2.0, %v243_v16  ;;  %v460_v20 = vpop.f32.mrb[1].mxu1 }
 0x101   :  { %v255_v21 = vsub.f32 %v253_v12, %v254_v19  ;;  %v155_v22 = vsub.f32 %v153_v13, %v154_v17 }
 0x102   :  { %v333_v24 = vpop.f32.mrb[2].mxu0 }
 0x103   :  { %v256_v25 = vmax.f32 %v255_v21, 0.0  ;;  %v338_v26 = vmul.f32 2.0, %v333_v24  ;;  %v156_v27 = vmax.f32 %v155_v22, 0.0  ;;  %v465_v28 = vpop.f32.mrb[3].mxu0 }
 0x105   :  { %v257_v29 = vadd.f32 1.0, %v256_v25  ;;  %v157_v30 = vadd.f32 1.0, %v156_v27  ;;  %v339_v31 = vsub.f32 %v337_v23, %v338_v26 }
 0x107   :  { %473 = vrcp.f32 %v257_v29  ;;  %v340_v32 = vmax.f32 %v339_v31, 0.0  ;;  %v376_v29 = vld [vmem:[#allocation5] sm:$0x1] }
 0x108   :  { %475 = vrcp.f32 %v157_v30 }
 0x109   :  { %v341_v33 = vadd.f32 1.0, %v340_v32 }
 0x10b   :  { %477 = vrcp.f32 %v341_v33 }
 0x111   :  { %v474_v34 = vpop.eup %473 }
 0x112   :  { %v476_v35 = vpop.eup %475  ;;  %v260_v36 = vsel %vm160_vm4, %v474_v34, 0.0 }
 0x113   :  { %261 = vadd.xlane.f32.xlu0 %v260_v36  ;;  %v161_v37 = vsel %vm160_vm4, %v476_v35, 0.0  ;;  %v362_v35 = vld [vmem:[#allocation4] sm:$0x1] }
 0x114   :  { %v165_v38 = vrot.slane %v161_v37, 4 }
 0x115   :  { %v478_v39 = vpop.eup %477 }
 0x116   :  { %v166_v40 = vadd.f32 %v165_v38, %v161_v37  ;;  %v345_v41 = vsel %vm160_vm4, %v478_v39, 0.0 }
 0x117   :  { %v346_v42 = vrot.slane %v345_v41, 4 }
 0x118   :  { %v167_v43 = vrot.slane %v166_v40, 2 }
 0x119   :  { %v347_v44 = vadd.f32 %v346_v42, %v345_v41 }
 0x11a   :  { %v168_v45 = vadd.f32 %v167_v43, %v166_v40 }
 0x11b   :  { %v348_v46 = vrot.slane %v347_v44, 2 }
 0x11c   :  { %v169_v47 = vrot.slane %v168_v45, 1 }
 0x11d   :  { %v349_v48 = vadd.f32 %v348_v46, %v347_v44 }
 0x11e   :  { %v170_v50 = vadd.f32 %v169_v47, %v168_v45 }
 0x11f   :  { %v350_v51 = vrot.slane %v349_v48, 1 }
 0x120   :  { %v171_v52 = vadd.f32 %v170_v50, %v164_v49 }
 0x121   :  { %v351_v54 = vadd.f32 %v350_v51, %v349_v48 }
 0x122   :  { %173 = vst.msk [vmem:[#allocation2] sm:$0x1] %vm46_vm3, %v171_v52 }
 0x123   :  { %v352_v55 = vadd.f32 %v351_v54, %v344_v53 }
 0x125   :  { %353 = vst.msk [vmem:[#allocation3] sm:$0x1] %vm46_vm3, %v352_v55 }
 0x129   :  { %v392_v56 = vld [vmem:[#allocation2] sm:$0x1] }
 0x12c   :  { %v393_v57 = vld [vmem:[#allocation3] sm:$0x1] }
 0x12d   :  { %v394_v58 = vadd.f32 %v393_v57, %v392_v56 }
 0x12f   :  { %v444_v59 = vadd.f32 -1.0, %v394_v58 }
 0x131   :  { %479 = vlog2.f32 %v444_v59 }
 0x13b   :  { %v480_v61 = vpop.eup %479 }
 0x13c   :  { %v397_v62 = vmul.f32 0.6931472, %v480_v61 }
 0x13e   :  { %v398_v1 = vsel %vm46_vm3, %v397_v62, 0.0 }
 0x13f   :  { %399 = vadd.xlane.f32.xlu1 %v398_v1 }
 0x143   :  { %357 = vadd.xlane.f32.xlu1 %v356_v2 }
 0x147   :  { %162 = vadd.xlane.f32.xlu1 %v161_v37 }
 0x1a0   :  { %v262_v5 = vpop.xlane.xlu0 %261 }
 0x1a1   :  { %v441_v10 = vadd.f32 -1.0, %v262_v5 }
 0x1cc   :  { %v400_v4 = vpop.xlane.xlu1 %399 }
 0x1cd   :  { %v401_v6 = vrot.slane %v400_v4, 4 }
 0x1cf   :  { %v402_v3 = vadd.f32 %v401_v6, %v400_v4 }
 0x1d0   :  { %v358_v7 = vpop.xlane.xlu1 %357 }
 0x1d1   :  { %v403_v8 = vrot.slane %v402_v3, 2  ;;  %v359_v9 = vadd.f32 1.0, %v358_v7 }
 0x1d3   :  { %481 = vrcp.f32 %v359_v9  ;;  %v404_v11 = vadd.f32 %v403_v8, %v402_v3 }
 0x1d4   :  { %v163_v12 = vpop.xlane.xlu1 %162 }
 0x1d5   :  { %v377_v13 = vadd.f32 %v441_v10, %v163_v12  ;;  %v405_v14 = vrot.slane %v404_v11, 1 }
 0x1d7   :  { %483 = vlog2.f32 %v377_v13  ;;  %v406_v15 = vadd.f32 %v405_v14, %v404_v11 }
 0x1d9   :  { %466 = vpush %v406_v15 }
 0x1dd   :  { %v482_v16 = vpop.eup %481 }
 0x1de   :  { %485 = vlog2.f32 %v482_v16 }
 0x1e1   :  { %v484_v17 = vpop.eup %483 }
 0x1e2   :  { %v379_v0 = vmul.f32 0.6931472, %v484_v17 }
 0x1e4   :  { %v380_v18 = vsel %vm365_vm6, %v379_v0, 0.0 }
 0x1e5   :  { %v381_v19 = vrot.slane %v380_v18, 4 }
 0x1e7   :  { %v382_v20 = vadd.f32 %v381_v19, %v380_v18 }
 0x1e8   :  { %v486_v21 = vpop.eup %485 }
 0x1e9   :  { %v364_v22 = vmul.f32 0.6931472, %v486_v21  ;;  %v383_v23 = vrot.slane %v382_v20, 2 }
 0x1eb   :  { %v366_v24 = vsel %vm365_vm6, %v364_v22, 0.0  ;;  %v384_v25 = vadd.f32 %v383_v23, %v382_v20 }
 0x1ec   :  { %v367_v26 = vrot.slane %v366_v24, 4 }
 0x1ed   :  { %v385_v27 = vrot.slane %v384_v25, 1 }
 0x1ee   :  { %v368_v28 = vadd.f32 %v367_v26, %v366_v24 }
 0x1ef   :  { %v386_v30 = vadd.f32 %v385_v27, %v384_v25 }
 0x1f0   :  { %v369_v31 = vrot.slane %v368_v28, 2 }
 0x1f1   :  { %v387_v32 = vadd.f32 %v386_v30, %v376_v29 }
 0x1f2   :  { %v370_v33 = vadd.f32 %v369_v31, %v368_v28 }
 0x1f3   :  { %388 = vst.msk [vmem:[#allocation5] sm:$0x1] %vm49_vm5, %v387_v32 }
 0x1f4   :  { %v371_v34 = vrot.slane %v370_v33, 1 }
 0x1f6   :  { %v372_v36 = vadd.f32 %v371_v34, %v370_v33 }
 0x1f8   :  { %v373_v37 = vadd.f32 %v372_v36, %v362_v35 }
 0x1fa   :  { %375 = vst.msk [vmem:[#allocation4] sm:$0x1] %vm49_vm5, %v373_v37  ;;  %v410_v38 = vld [vmem:[#allocation5] sm:$0x1] }
 0x1fb   :  { %v411_v41 = vmul.f32 0.25, %v410_v38 }
 0x201   :  { %v412_v42 = vld [vmem:[#allocation4] sm:$0x1] }
 0x202   :  { %v413_v44 = vmul.f32 0.25, %v412_v42 }
 0x20a   :  { %s467_s2 = spop %466 }
 0x20b   :  { %v408_v39 = vstv %s467_s2 }
 0x20c   :  { %v409_v40 = vmul.f32 0.25, %v408_v39 }
 0x20e   :  { %v414_v43 = vadd.f32 %v411_v41, %v409_v40 }
 0x210   :  { %v415_v45 = vmul.f32 0.5, %v414_v43 }
 0x212   :  { %v416_v46 = vsub.f32 %v413_v44, %v415_v45 }
 0x214   :  { %v417_v47 = vsub.f32 0.0, %v416_v46 }
 0x216   :  { %418 = vst.msk [vmem:[#allocation11] sm:$0x1] %vm49_vm5, %v417_v47 }
 0x217   :  { %542 = shalt.err (!%p539_p6)
}
 0x218   :  { %s543_s20 = scalar_lea.hbm %s680_s4, 16 }
 0x219   :  { %p544_p7 = scmp.ne.s32.totalorder %s680_s4, %s543_s20  ;;  %p547_p8 = scmp.lt.u32.totalorder %s543_s20, %s680_s4 }
 0x21b   :  { %p549_p9 = pnand %p547_p8, %p544_p7 }
 0x21d   :  { %552 = shalt.err (!%p549_p9)
}
 0x21e   :  { %428 = dma.vmem_to_hbm [thread:$0]  %s426_s15, 16, %s680_s4, [#allocation8]  }
 0x21f   :  { %557 = dma.done.wait [#allocation8], 16  }
 0x220   :  { %558 = vsyncadd [#allocation8], 4294967280 }
 0x221   :  { %432 = vsyncpa [#allocation7], 1 }
 0x222   :  { %433 = vsyncpa [#allocation10], 1 }
 0x223   :  { %434 = vsyncpa [#allocation8], 1 }

</bundles_post_ra>
